<compile_context>
chip_gen: v6e
topology: v6e:2x2x1
jax: 0.10.0
libtpu: 0.0.40
codegen_flags: <defaults>
</compile_context>

<pallas_src>
import math
import functools

import numpy as np
import jax
import jax.numpy as jnp
from jax.experimental import pallas as pl
from jax.experimental.pallas import tpu as pltpu


def _round_up(x, m):
    return ((x + m - 1) // m) * m


def _cdiv(a, b):
    return -(-a // b)


# ----------------------------------------------------------------------------
# Deterministic parameter / buffer construction (plain numpy glue).
# ----------------------------------------------------------------------------

def hann_window_periodic(W):
    # torch.hann_window(W) (periodic=True): 0.5 - 0.5*cos(2*pi*n/W)
    n = np.arange(W, dtype=np.float64)
    return (0.5 - 0.5 * np.cos(2.0 * np.pi * n / W)).astype(np.float32)


def gaussian_windows(n, nWin):
    # GaussianWindows with its deterministic __init__:
    #   sigma  = sigmoid(-1)               (same scalar for every window)
    #   center = sigmoid(logit(k/(n+1))) = k/(n+1)
    sigma = 1.0 / (1.0 + np.exp(1.0))
    center = np.arange(1, n + 1, dtype=np.float64) / (n + 1)        # (n,)
    x = np.arange(nWin, dtype=np.float64)                            # (nWin,)
    Y = np.exp(-0.5 * ((x[:, None] - nWin * center[None, :]) /
                       (sigma * nWin / 2.0)) ** 2)                    # (nWin, n)
    return Y.astype(np.float32)


def melscale_fbanks(n_freqs, f_min, f_max, n_mels, sample_rate):
    # torchaudio.functional.melscale_fbanks defaults: mel_scale="htk", norm=None
    all_freqs = np.linspace(0.0, sample_rate // 2, n_freqs)
    hz2mel = lambda f: 2595.0 * np.log10(1.0 + f / 700.0)
    mel2hz = lambda m: 700.0 * (10.0 ** (m / 2595.0) - 1.0)
    m_pts = np.linspace(hz2mel(f_min), hz2mel(f_max), n_mels + 2)
    f_pts = mel2hz(m_pts)
    f_diff = f_pts[1:] - f_pts[:-1]
    slopes = f_pts[None, :] - all_freqs[:, None]                      # (F, n_mels+2)
    down = (-1.0 * slopes[:, :-2]) / f_diff[:-1]
    up = slopes[:, 2:] / f_diff[1:]
    fb = np.maximum(0.0, np.minimum(down, up))
    return fb.astype(np.float32)                                      # (F, n_mels)


def rdft_matrices(W):
    # rfft with norm='ortho': X[k] = sum_n x[n] * exp(-2j*pi*k*n/W) / sqrt(W)
    F = W // 2 + 1
    n = np.arange(W, dtype=np.float64)[:, None]
    k = np.arange(F, dtype=np.float64)[None, :]
    ang = 2.0 * np.pi * n * k / W
    scale = 1.0 / np.sqrt(W)
    cosM = (np.cos(ang) * scale).astype(np.float32)                   # (W, F)
    sinM = (-np.sin(ang) * scale).astype(np.float32)                  # (W, F)
    return cosM, sinM


def build_mel_matrices(windowSize, f_min, f_max, n_mels, fs, nExtraWins):
    """Fold the per-channel windows into one concatenated [cos | -sin] real-DFT
    matrix and build a stacked block-diagonal mel map whose columns are already
    permuted to (m*C + c) order (PyTorch output layout)."""
    W = windowSize
    F = W // 2 + 1
    C = nExtraWins + 1
    M = n_mels

    hann = hann_window_periodic(W)                                    # (W,)
    if nExtraWins > 0:
        gw = gaussian_windows(nExtraWins, W)                          # (W, nExtra)
        wins = np.concatenate([hann[None, :], gw.T], axis=0)          # (C, W)
    else:
        wins = hann[None, :]
    cosM, sinM = rdft_matrices(W)                                     # (W, F)
    f2m = melscale_fbanks(F, f_min, f_max, M, fs)                     # (F, M)

    CFp = _round_up(C * F, 128)       # per-part concatenated freq axis (lane aligned)
    K2 = 2 * CFp                      # [re part | im part]
    CM = C * M                        # narrow output width (= full array dim)

    cs_big = np.zeros((W, K2), np.float32)        # windowed [cos | -sin], all channels
    f2m_big = np.zeros((K2, CM), np.float32)      # stacked block-diag, permuted cols
    for c in range(C):
        cs_big[:, c * F:(c + 1) * F] = wins[c][:, None] * cosM
        cs_big[:, CFp + c * F:CFp + (c + 1) * F] = wins[c][:, None] * sinM
        cols = np.arange(M) * C + c               # (m*C + c) column order
        f2m_big[c * F:(c + 1) * F, cols] = f2m            # re^2 contribution
        f2m_big[CFp + c * F:CFp + (c + 1) * F, cols] = f2m  # im^2 contribution
    # TODO(synk): for realistic W / n_mels the block-diagonal zeros cost ~C x the
    # mel-matmul MACs; switch to C aligned per-channel slices against one dense
    # (round_up(F,128), round_up(M,128)) mel matrix when that regime matters.
    return wins, f2m, cs_big, f2m_big


# ----------------------------------------------------------------------------
# Pallas kernel: one windowed real-DFT matmul -> power -> mel matmul -> log.
# ----------------------------------------------------------------------------

def mel_kernel(frames_ref, cs_ref, f2m_ref, out_ref, *, apply_log, eps):
    # Frames stream in as f32; cast to bf16 in-kernel (VPU) for the MXU pass.
    x = frames_ref[...].astype(jnp.bfloat16)                          # (tn, W)
    # Single DFT matmul: columns are [re(ch0..C-1) | im(ch0..C-1)], f32 accum.
    cs = jnp.dot(x, cs_ref[...], preferred_element_type=jnp.float32)  # (tn, 2*CFp)
    power = cs * cs                                                    # f32, no cast
    # Stacked mel map sums re^2 and im^2 blocks in one f32 matmul.
    mel = jnp.dot(power, f2m_ref[...],
                  preferred_element_type=jnp.float32)                  # (tn, C*M)
    if apply_log:
        mel = (jnp.log(mel + eps) - math.log(eps)) * (1.0 / -math.log(eps))
    out_ref[...] = mel                                                 # narrow f32 store


def mel_spectrum(frames, cs_big, f2m_big, *,
                 n_mels, n_channels, log, eps, tile_n=512):
    """frames: (B, T, W) f32.  cs_big: (W, 2*CFp) bf16.  f2m_big: (2*CFp, C*M) f32.
    Returns (B, T, n_mels, nChannel) f32, matching MelSpectrum(toMono=False)."""
    B, T, W = frames.shape
    C, M = n_channels, n_mels
    CM = C * M
    K2 = cs_big.shape[1]
    N = B * T

    frames2d = frames.reshape(N, W)            # free reshape, no cast, no pad

    # Row tile: multiple of 8 (f32 sublane), clamped so the grid has >= 2 steps
    # (keeps both v7x TensorCores busy); ragged tails handled by Pallas itself.
    tn = max(8, (min(tile_n, _round_up(N, 8)) // 8) * 8)
    tn = min(tn, _round_up(_cdiv(N, 2), 8))
    tn = max(tn, 8)
    grid = _cdiv(N, tn)

    # VMEM budget: only raise the scoped limit when the working set needs it
    # (stay under the smallest physical VMEM, v7x = 64 MiB).  For realistic
    # window sizes prefer shrinking tile_n instead.
    est = (2 * cs_big.size * cs_big.dtype.itemsize
           + 2 * f2m_big.size * f2m_big.dtype.itemsize
           + 2 * tn * W * 4          # double-buffered frame tiles (f32)
           + 2 * tn * CM * 4         # double-buffered output tiles (f32)
           + 3 * tn * K2 * 4)        # cs / power / headroom intermediates (f32)
    cparams = {"dimension_semantics": ("parallel",)}
    if est > (12 << 20):
        cparams["vmem_limit_bytes"] = int(min(max(est * 3 // 2, 32 << 20), 60 << 20))

    kern = functools.partial(mel_kernel, apply_log=log, eps=eps)
    out = pl.pallas_call(
        kern,
        out_shape=jax.ShapeDtypeStruct((N, CM), jnp.float32),
        grid=(grid,),
        in_specs=[
            pl.BlockSpec((tn, W), lambda i: (i, 0)),     # frame tile (streamed, f32)
            pl.BlockSpec((W, K2), lambda i: (0, 0)),     # windowed [cos|-sin] (resident)
            pl.BlockSpec((K2, CM), lambda i: (0, 0)),    # stacked mel map (resident)
        ],
        out_specs=pl.BlockSpec((tn, CM), lambda i: (i, 0)),  # narrow (= full last dim)
        compiler_params=pltpu.CompilerParams(**cparams),
    )(frames2d, cs_big, f2m_big)

    # Columns are already (m*C + c): direct reshape to (..., n_mels, nChannel).
    return out.reshape(B, T, M, C)


# TODO(synk): toMono=True path (mean over dim -4 of the power spectrogram) is not
# exercised; this script models MelSpectrum with toMono=False.

if __name__ == "__main__":
    # MelSpectrum hyperparameters (small but consistent with the module).
    windowSize = 64
    f_min, f_max, fs = 30.0, 8000.0, 16000
    n_mels = 16
    nExtraWins = 2            # -> nChannel = 3
    use_log = True
    eps = 1e-5
    C = nExtraWins + 1

    wins_np, f2m_np, cs_big_np, f2m_big_np = build_mel_matrices(
        windowSize, f_min, f_max, n_mels, fs, nExtraWins)

    # Convert constants to their kernel dtypes ONCE (no per-call casts).
    cs_big = jnp.asarray(cs_big_np).astype(jnp.bfloat16)   # (W, 2*CFp) bf16
    f2m_big = jnp.asarray(f2m_big_np)                      # (2*CFp, C*M) f32

    key = jax.random.PRNGKey(0)
    B, T = 2, 200             # N = 400 frames -> 2 grid steps of 200 rows
    frames = jax.random.normal(key, (B, T, windowSize), dtype=jnp.float32)

    out = mel_spectrum(frames, cs_big, f2m_big,
                       n_mels=n_mels, n_channels=C, log=use_log, eps=eps,
                       tile_n=512)
    out = jax.block_until_ready(out)

    # Pure-JAX f32 reference mirroring the PyTorch forward exactly.
    wins_j = jnp.asarray(wins_np)
    f2m_j = jnp.asarray(f2m_np)
    spec = jnp.fft.rfft(frames[..., None, :] * wins_j, norm="ortho")  # (B,T,C,F)
    power = jnp.abs(spec) ** 2
    ref = jnp.swapaxes(power @ f2m_j, -1, -2)                          # (B,T,M,C)
    if use_log:
        ref = (jnp.log(ref + eps) - math.log(eps)) / (-math.log(eps))

    assert out.shape == (B, T, n_mels, C), out.shape
    max_err = float(jnp.max(jnp.abs(out - ref)))
    mean_err = float(jnp.mean(jnp.abs(out - ref)))
    # Remaining error comes from the bf16 DFT matmul inputs (frames + windowed
    # cos/sin); power and the mel matmul now stay in f32.
    assert max_err < 2.5e-2, max_err
    assert mean_err < 1.5e-3, mean_err
    print("KERNEL_OK")
</pallas_src>

<mosaic_0001>
module attributes {stable_mosaic.version = 11 : i64} {
  func.func @mel_kernel(%arg0: i32, %arg1: memref<200x64xf32, #tpu.memory_space<vmem>>, %arg2: memref<64x256xbf16, #tpu.memory_space<vmem>>, %arg3: memref<256x48xf32, #tpu.memory_space<vmem>>, %arg4: memref<200x48xf32, #tpu.memory_space<vmem>>) attributes {dimension_semantics = [#tpu.dimension_semantics<parallel>], iteration_bounds = array<i64: 2>, scalar_prefetch = 0 : i64, scratch_operands = 0 : i64, tpu.core_type = #tpu.core_type<tc>, window_params = [{transform_indices = @transform_0, window_bounds = array<i64: 200, 64>}, {pipeline_mode = #tpu.pipeline_mode<synchronous>, transform_indices = @transform_1, window_bounds = array<i64: 64, 256>}, {pipeline_mode = #tpu.pipeline_mode<synchronous>, transform_indices = @transform_2, window_bounds = array<i64: 256, 48>}, {transform_indices = @transform_3, window_bounds = array<i64: 200, 48>}]} {
    %c0 = arith.constant 0 : index
    %c0_0 = arith.constant 0 : index
    %0 = vector.load %arg1[%c0, %c0_0] : memref<200x64xf32, #tpu.memory_space<vmem>>, vector<200x64xf32>
    %1 = arith.truncf %0 : vector<200x64xf32> to vector<200x64xbf16>
    %c0_1 = arith.constant 0 : index
    %c0_2 = arith.constant 0 : index
    %2 = vector.load %arg2[%c0_1, %c0_2] : memref<64x256xbf16, #tpu.memory_space<vmem>>, vector<64x256xbf16>
    %cst = arith.constant dense<0.000000e+00> : vector<200x256xf32>
    %3 = tpu.matmul %1, %2, %cst {dimension_numbers = #tpu.dot_dimension_numbers<[1], [0], [0], [1], [0, 0, 1, 1], [], []>} : vector<200x64xbf16>, vector<64x256xbf16>, vector<200x256xf32> -> vector<200x256xf32>
    %4 = arith.mulf %3, %3 : vector<200x256xf32>
    %c0_3 = arith.constant 0 : index
    %c0_4 = arith.constant 0 : index
    %5 = vector.load %arg3[%c0_3, %c0_4] : memref<256x48xf32, #tpu.memory_space<vmem>>, vector<256x48xf32>
    %cst_5 = arith.constant dense<0.000000e+00> : vector<200x48xf32>
    %6 = tpu.matmul %4, %5, %cst_5 {dimension_numbers = #tpu.dot_dimension_numbers<[1], [0], [0], [1], [0, 0, 1, 1], [], []>} : vector<200x256xf32>, vector<256x48xf32>, vector<200x48xf32> -> vector<200x48xf32>
    %cst_6 = arith.constant 9.99999974E-6 : f32
    %7 = vector.broadcast %cst_6 : f32 to vector<200x48xf32>
    %8 = arith.addf %6, %7 : vector<200x48xf32>
    %9 = math.log %8 : vector<200x48xf32>
    %cst_7 = arith.constant -11.5129251 : f32
    %10 = vector.broadcast %cst_7 : f32 to vector<200x48xf32>
    %11 = arith.subf %9, %10 : vector<200x48xf32>
    %cst_8 = arith.constant 0.0868588984 : f32
    %12 = vector.broadcast %cst_8 : f32 to vector<200x48xf32>
    %13 = arith.mulf %11, %12 : vector<200x48xf32>
    %c0_9 = arith.constant 0 : index
    %c0_10 = arith.constant 0 : index
    %14 = vector.load %arg4[%c0_9, %c0_10] : memref<200x48xf32, #tpu.memory_space<vmem>>, vector<200x48xf32>
    tpu.vector_store %arg4[%c0_9, %c0_10], %13 {strides = array<i32>} : memref<200x48xf32, #tpu.memory_space<vmem>>, vector<200x48xf32>,
    return
  }
  func.func @transform_0(%arg0: i32) -> (i32, i32) {
    %c0_i32 = arith.constant 0 : i32
    %c0_i32_0 = arith.constant 0 : i32
    return %arg0, %c0_i32 : i32, i32
  }
  func.func @transform_1(%arg0: i32) -> (i32, i32) {
    %c0_i32 = arith.constant 0 : i32
    %c0_i32_0 = arith.constant 0 : i32
    %c0_i32_1 = arith.constant 0 : i32
    return %c0_i32, %c0_i32_0 : i32, i32
  }
  func.func @transform_2(%arg0: i32) -> (i32, i32) {
    %c0_i32 = arith.constant 0 : i32
    %c0_i32_0 = arith.constant 0 : i32
    %c0_i32_1 = arith.constant 0 : i32
    return %c0_i32, %c0_i32_0 : i32, i32
  }
  func.func @transform_3(%arg0: i32) -> (i32, i32) {
    %c0_i32 = arith.constant 0 : i32
    %c0_i32_0 = arith.constant 0 : i32
    return %arg0, %c0_i32 : i32, i32
  }
}

</mosaic_0001>

<bundles_post_ra>
// kernel: tpu_custom_call.1
= control target key start
LH: loop header
LB: loop body
LE: loop exit
PB: predicated region body
PF: predicated region fallthrough
CT: control target
= control target key end

     0   :  { %s1137_s12 = smov 0   ;;  %s1450_s0 = inlined_call_operand.vmem [shape: f32[400,64], index: 0, kind: input, shape index: {}]   ;;  %s1451_s1 = inlined_call_operand.vmem [shape: bf16[64,256], index: 1, kind: input, shape index: {}]   ;;  %s1452_s2 = inlined_call_operand.vmem [shape: f32[256,48], index: 2, kind: input, shape index: {}]   ;;  %s1453_s3 = inlined_call_operand.vmem [shape: f32[400,48], index: 3, kind: output, shape index: {}]  }
   0x1 LB: > { %s916_s13 = sadd.s32 4294967295, %s1113_s12   ;;  %p920_p0 = scmp.ge.s32.totalorder %s1113_s12, 1  ;;  %s1113_s12 = sphi %s1137_s12, %s13_s12  }
   0x2   : > { %p138_p1 = scmp.lt.s32.totalorder %s1113_s12, 3 }
   0x4   : > { %p139_p2 = pnand %p920_p0, %p138_p1 }
   0x5   : > { %s162_s16 = smul.u32 (!%p139_p2), 25, %s916_s13 }
   0x6   : > { %142 = sbr.rel (%p139_p2) target bundleno = 538 (0x21a), region = 32 }
   0x7   : > { %p163_p3 = scmp.lt.s32.totalorder (!%p139_p2), %s162_s16, 49 }
   0xb   : > { %v1045_v0 = vld [vmem:[%s1451_s1 + $0x34] ss:$8 sps:$4 sm:$0xff]   ;;  %v1047_v1 = vld [vmem:[%s1451_s1 + $0x30] ss:$8 sps:$4 sm:$0xff]   ;;  %v1115_v2 = vmov 0   ;;  %v1116_v4 = vmov 0.0  }
   0xc   : > { %333 = vmatprep.mubr.bf16.mxu0 %v1115_v2  ;;  %309 = vmatprep.subr.bf16.mxu0 %v1045_v0  ;;  %v1048_v3 = vld [vmem:[%s1451_s1 + $0x24] ss:$8 sps:$4 sm:$0xff]   ;;  %v1050_v5 = vld [vmem:[%s1451_s1 + $0x20] ss:$8 sps:$4 sm:$0xff]   ;;  %v1051_v6 = vld [vmem:[%s1451_s1 + $0x14] ss:$8 sps:$4 sm:$0xff]  }
   0xd   : > { %971 = vmatprep.subr.mxu1 %v1116_v4  ;;  %310 = vmatpush1.bf16.msra.mxu0 %v1047_v1  ;;  %s1455_s16 = smov (!%p163_p3, %s162_s16), 49  ;;  %v527_v7 = vld [vmem:[%s1452_s2 + $0x78] sm:$0xff]  ;;  %v526_v9 = vld [vmem:[%s1452_s2 + $0x70] sm:$0xff]  ;;  %v1054_v10 = vld [vmem:[%s1451_s1 + $0x4] ss:$8 sps:$4 sm:$0xff]   ;;  %vm261_vm0 = vcmask 523264  }
   0xe   : > { %311 = vmatprep.subr.bf16.mxu0 %v1048_v3  ;;  %s921_s27 = sshll.u32 %s1455_s16, 3  ;;  %1003 = vmatpush1.msra.mxu1 %v527_v7  ;;  %v1053_v8 = vld [vmem:[%s1451_s1 + $0x10] ss:$8 sps:$4 sm:$0xff]   ;;  %v525_v11 = vld [vmem:[%s1452_s2 + $0x68] sm:$0xff]  ;;  %v524_v15 = vld [vmem:[%s1452_s2 + $0x60] sm:$0xff]  ;;  %vm834_vm1 = vcmask 392192  }
   0xf   : > { %972 = vmatprep.subr.mxu1 %v1116_v4  ;;  %s1183_s9 = scalar_lea.vmem %s1450_s0, %s921_s27  ;;  %v1056_v12 = vld [vmem:[%s1451_s1] ss:$8 sps:$4 sm:$0xff]   ;;  %v523_v16 = vld [vmem:[%s1452_s2 + $0x58] sm:$0xff]  ;;  %v522_v18 = vld [vmem:[%s1452_s2 + $0x50] sm:$0xff]  ;;  %s1395_s30 = scalar_lea.vmem %s1453_s3, %s921_s27 }
  0x10   : > { %1004 = vmatpush1.msra.mxu1 %v526_v9  ;;  %v175_v13 = vld [vmem:[%s1183_s9] sm:$0xff]  ;;  %v176_v14 = vld [vmem:[%s1183_s9 + $0x8] sm:$0xff]  ;;  %v177_v20 = vld [vmem:[%s1183_s9 + $0x10] sm:$0xff] }
  0x11   : > { %312 = vmatpush1.bf16.msra.mxu0 %v1050_v5  ;;  %973 = vmatprep.subr.mxu1 %v1116_v4  ;;  %v200_v17 = vpack.c.bf16 %v176_v14, %v175_v13  ;;  %v521_v19 = vld [vmem:[%s1452_s2 + $0x48] sm:$0xff]  ;;  %v178_v21 = vld [vmem:[%s1183_s9 + $0x18] sm:$0xff]  ;;  %v520_v22 = vld [vmem:[%s1452_s2 + $0x40] sm:$0xff] }
  0x12   : > { %313 = vmatprep.subr.bf16.mxu0 %v1051_v6  ;;  %1005 = vmatpush1.msra.mxu1 %v525_v11  ;;  %v201_v23 = vpack.c.bf16 %v178_v21, %v177_v20  ;;  %v519_v24 = vld [vmem:[%s1452_s2 + $0x38] sm:$0xff]  ;;  %v518_v25 = vld [vmem:[%s1452_s2 + $0x30] sm:$0xff]  ;;  %v179_v26 = vld [vmem:[%s1183_s9 + $0x20] sm:$0xff] }
  0x13   : > { %974 = vmatprep.subr.mxu1 %v1116_v4  ;;  %v180_v27 = vld [vmem:[%s1183_s9 + $0x28] sm:$0xff]  ;;  %v516_v30 = vld [vmem:[%s1452_s2 + $0x20] sm:$0xff]  ;;  %v515_v31 = vld [vmem:[%s1452_s2 + $0x18] sm:$0xff] }
  0x14   : > { %1006 = vmatpush1.msra.mxu1 %v524_v15  ;;  %v517_v28 = vld [vmem:[%s1452_s2 + $0x28] sm:$0xff]  ;;  %v202_v29 = vpack.c.bf16 %v180_v27, %v179_v26  ;;  %v181_v32 = vld [vmem:[%s1183_s9 + $0x30] sm:$0xff]  ;;  %v182_v33 = vld [vmem:[%s1183_s9 + $0x38] sm:$0xff] }
  0x15   : > { %314 = vmatpush1.bf16.msra.mxu0 %v1053_v8  ;;  %975 = vmatprep.subr.mxu1 %v1116_v4  ;;  %v514_v34 = vld [vmem:[%s1452_s2 + $0x10] sm:$0xff]  ;;  %v203_v35 = vpack.c.bf16 %v182_v33, %v181_v32  ;;  %v513_v36 = vld [vmem:[%s1452_s2 + $0x8] sm:$0xff]  ;;  %v512_v37 = vld [vmem:[%s1452_s2] sm:$0xff] }
  0x16   : > { %315 = vmatprep.subr.bf16.mxu0 %v1054_v10  ;;  %1007 = vmatpush1.msra.mxu1 %v523_v16  ;;  %v183_v38 = vld [vmem:[%s1183_s9 + $0x40] sm:$0xff]  ;;  %v184_v39 = vld [vmem:[%s1183_s9 + $0x48] sm:$0xff]  ;;  %v543_v40 = vld [vmem:[%s1452_s2 + $0xf8] sm:$0xff] }
  0x17   : > { %976 = vmatprep.subr.mxu1 %v1116_v4  ;;  %v204_v41 = vpack.c.bf16 %v184_v39, %v183_v38  ;;  %v542_v42 = vld [vmem:[%s1452_s2 + $0xf0] sm:$0xff]  ;;  %v541_v43 = vld [vmem:[%s1452_s2 + $0xe8] sm:$0xff]  ;;  %v186_v45 = vld [vmem:[%s1183_s9 + $0x58] sm:$0xff] }
  0x18   : > { %1008 = vmatpush1.msra.mxu1 %v522_v18  ;;  %v185_v44 = vld [vmem:[%s1183_s9 + $0x50] sm:$0xff]  ;;  %v540_v46 = vld [vmem:[%s1452_s2 + $0xe0] sm:$0xff]  ;;  %v539_v48 = vld [vmem:[%s1452_s2 + $0xd8] sm:$0xff] }
  0x19   : > { %316 = vmatpush1.bf16.msra.mxu0 %v1056_v12  ;;  %977 = vmatprep.subr.mxu1 %v1116_v4  ;;  %v205_v47 = vpack.c.bf16 %v186_v45, %v185_v44  ;;  %v538_v49 = vld [vmem:[%s1452_s2 + $0xd0] sm:$0xff]  ;;  %v187_v50 = vld [vmem:[%s1183_s9 + $0x60] sm:$0xff]  ;;  %v188_v51 = vld [vmem:[%s1183_s9 + $0x68] sm:$0xff] }
  0x1a   : > { %544 = vmatprep.subr.mxu0 %v1116_v4  ;;  %1009 = vmatpush1.msra.mxu1 %v521_v19  ;;  %v537_v52 = vld [vmem:[%s1452_s2 + $0xc8] sm:$0xff]  ;;  %v206_v53 = vpack.c.bf16 %v188_v51, %v187_v50  ;;  %v536_v54 = vld [vmem:[%s1452_s2 + $0xc0] sm:$0xff]  ;;  %v535_v55 = vld [vmem:[%s1452_s2 + $0xb8] sm:$0xff] }
  0x1b   : > { %978 = vmatprep.subr.mxu1 %v1116_v4  ;;  %v534_v56 = vld [vmem:[%s1452_s2 + $0xb0] sm:$0xff]  ;;  %v190_v58 = vld [vmem:[%s1183_s9 + $0x78] sm:$0xff]  ;;  %v533_v59 = vld [vmem:[%s1452_s2 + $0xa8] sm:$0xff] }
  0x1c   : > { %931 = vmatmul.mubr.msk.bf16.vlgmr.msra.gmra.mxu0 %vm261_vm0, %v200_v17  ;;  %1010 = vmatpush1.msra.mxu1 %v520_v22  ;;  %v189_v57 = vld [vmem:[%s1183_s9 + $0x70] sm:$0xff]  ;;  %v532_v61 = vld [vmem:[%s1452_s2 + $0xa0] sm:$0xff]  ;;  %v531_v62 = vld [vmem:[%s1452_s2 + $0x98] sm:$0xff] }
  0x1d   : > { %343 = vmatprep.mubr.bf16.mxu0 %v1115_v2  ;;  %545 = vmatpush1.msra.mxu0 %v527_v7  ;;  %v207_v60 = vpack.c.bf16 %v190_v58, %v189_v57  ;;  %v191_v63 = vld [vmem:[%s1183_s9 + $0x80] sm:$0xff]  ;;  %v192_v0 = vld [vmem:[%s1183_s9 + $0x88] sm:$0xff]  ;;  %v530_v3 = vld [vmem:[%s1452_s2 + $0x90] sm:$0xff] }
  0x1e   : > { %546 = vmatprep.subr.mxu0 %v1116_v4  ;;  %979 = vmatprep.subr.mxu1 %v1116_v4  ;;  %v208_v1 = vpack.c.bf16 %v192_v0, %v191_v63  ;;  %v193_v5 = vld [vmem:[%s1183_s9 + $0x90] sm:$0xff]  ;;  %v194_v6 = vld [vmem:[%s1183_s9 + $0x98] sm:$0xff]  ;;  %v529_v7 = vld [vmem:[%s1452_s2 + $0x88] sm:$0xff] }
  0x1f   : > { %547 = vmatpush1.msra.mxu0 %v526_v9  ;;  %1011 = vmatpush1.msra.mxu1 %v519_v24  ;;  %v209_v8 = vpack.c.bf16 %v194_v6, %v193_v5  ;;  %v528_v9 = vld [vmem:[%s1452_s2 + $0x80] sm:$0xff]  ;;  %v197_v13 = vld [vmem:[%s1183_s9 + $0xb0] sm:$0xff]  ;;  %v198_v14 = vld [vmem:[%s1183_s9 + $0xb8] sm:$0xff] }
  0x20   : > { %548 = vmatprep.subr.mxu0 %v1116_v4  ;;  %980 = vmatprep.subr.mxu1 %v1116_v4  ;;  %v195_v10 = vld [vmem:[%s1183_s9 + $0xa0] sm:$0xff] }
  0x21   : > { %549 = vmatpush1.msra.mxu0 %v525_v11  ;;  %1012 = vmatpush1.msra.mxu1 %v518_v25  ;;  %v196_v11 = vld [vmem:[%s1183_s9 + $0xa8] sm:$0xff] }
  0x22   : > { %550 = vmatprep.subr.mxu0 %v1116_v4  ;;  %981 = vmatprep.subr.mxu1 %v1116_v4  ;;  %v210_v12 = vpack.c.bf16 %v196_v11, %v195_v10 }
  0x23   : > { %551 = vmatpush1.msra.mxu0 %v524_v15  ;;  %1013 = vmatpush1.msra.mxu1 %v517_v28  ;;  %v211_v15 = vpack.c.bf16 %v198_v14, %v197_v13 }
  0x24   : > { %932 = vmatmul.mubr.msk.bf16.gmra.mxu0 %vm261_vm0, %v201_v23  ;;  %552 = vmatprep.subr.mxu0 %v1116_v4 }
  0x25   : > { %353 = vmatprep.mubr.bf16.mxu0 %v1115_v2  ;;  %553 = vmatpush1.msra.mxu0 %v523_v16 }
  0x26   : > { %554 = vmatprep.subr.mxu0 %v1116_v4  ;;  %982 = vmatprep.subr.mxu1 %v1116_v4 }
  0x27   : > { %555 = vmatpush1.msra.mxu0 %v522_v18  ;;  %1014 = vmatpush1.msra.mxu1 %v516_v30 }
  0x28   : > { %556 = vmatprep.subr.mxu0 %v1116_v4  ;;  %983 = vmatprep.subr.mxu1 %v1116_v4 }
  0x29   : > { %557 = vmatpush1.msra.mxu0 %v521_v19  ;;  %1015 = vmatpush1.msra.mxu1 %v515_v31 }
  0x2a   : > { %558 = vmatprep.subr.mxu0 %v1116_v4  ;;  %984 = vmatprep.subr.mxu1 %v1116_v4 }
  0x2b   : > { %559 = vmatpush1.msra.mxu0 %v520_v22  ;;  %1016 = vmatpush1.msra.mxu1 %v514_v34 }
  0x2c   : > { %933 = vmatmul.mubr.msk.bf16.gmra.mxu0 %vm261_vm0, %v202_v29  ;;  %560 = vmatprep.subr.mxu0 %v1116_v4 }
  0x2d   : > { %363 = vmatprep.mubr.bf16.mxu0 %v1115_v2  ;;  %561 = vmatpush1.msra.mxu0 %v519_v24 }
  0x2e   : > { %562 = vmatprep.subr.mxu0 %v1116_v4  ;;  %985 = vmatprep.subr.mxu1 %v1116_v4 }
  0x2f   : > { %563 = vmatpush1.msra.mxu0 %v518_v25  ;;  %1017 = vmatpush1.msra.mxu1 %v513_v36 }
  0x30   : > { %564 = vmatprep.subr.mxu0 %v1116_v4  ;;  %986 = vmatprep.subr.mxu1 %v1116_v4 }
  0x31   : > { %565 = vmatpush1.msra.mxu0 %v517_v28  ;;  %1018 = vmatpush1.msra.mxu1 %v512_v37 }
  0x32   : > { %566 = vmatprep.subr.mxu0 %v1116_v4  ;;  %987 = vmatprep.subr.mxu1 %v1116_v4 }
  0x33   : > { %567 = vmatpush1.msra.mxu0 %v516_v30  ;;  %1019 = vmatpush2.msra.mxu1 %v543_v40 }
  0x34   : > { %934 = vmatmul.mubr.msk.bf16.gmra.mxu0 %vm261_vm0, %v203_v35  ;;  %568 = vmatprep.subr.mxu0 %v1116_v4 }
  0x35   : > { %373 = vmatprep.mubr.bf16.mxu0 %v1115_v2  ;;  %569 = vmatpush1.msra.mxu0 %v515_v31 }
  0x36   : > { %570 = vmatprep.subr.mxu0 %v1116_v4  ;;  %988 = vmatprep.subr.mxu1 %v1116_v4 }
  0x37   : > { %571 = vmatpush1.msra.mxu0 %v514_v34  ;;  %1020 = vmatpush2.msra.mxu1 %v542_v42 }
  0x38   : > { %572 = vmatprep.subr.mxu0 %v1116_v4  ;;  %989 = vmatprep.subr.mxu1 %v1116_v4 }
  0x39   : > { %573 = vmatpush1.msra.mxu0 %v513_v36  ;;  %1021 = vmatpush2.msra.mxu1 %v541_v43 }
  0x3a   : > { %574 = vmatprep.subr.mxu0 %v1116_v4  ;;  %990 = vmatprep.subr.mxu1 %v1116_v4 }
  0x3b   : > { %575 = vmatpush1.msra.mxu0 %v512_v37  ;;  %1022 = vmatpush2.msra.mxu1 %v540_v46 }
  0x3c   : > { %935 = vmatmul.mubr.msk.bf16.gmra.mxu0 %vm261_vm0, %v204_v41  ;;  %576 = vmatprep.subr.mxu0 %v1116_v4 }
  0x3d   : > { %383 = vmatprep.mubr.bf16.mxu0 %v1115_v2  ;;  %577 = vmatpush2.msra.mxu0 %v543_v40 }
  0x3e   : > { %578 = vmatprep.subr.mxu0 %v1116_v4  ;;  %991 = vmatprep.subr.mxu1 %v1116_v4 }
  0x3f   : > { %579 = vmatpush2.msra.mxu0 %v542_v42  ;;  %1023 = vmatpush2.msra.mxu1 %v539_v48 }
  0x40   : > { %580 = vmatprep.subr.mxu0 %v1116_v4  ;;  %992 = vmatprep.subr.mxu1 %v1116_v4 }
  0x41   : > { %581 = vmatpush2.msra.mxu0 %v541_v43  ;;  %1024 = vmatpush2.msra.mxu1 %v538_v49 }
  0x42   : > { %582 = vmatprep.subr.mxu0 %v1116_v4  ;;  %993 = vmatprep.subr.mxu1 %v1116_v4 }
  0x43   : > { %583 = vmatpush2.msra.mxu0 %v540_v46  ;;  %1025 = vmatpush2.msra.mxu1 %v537_v52 }
  0x44   : > { %936 = vmatmul.mubr.msk.bf16.gmra.mxu0 %vm261_vm0, %v205_v47  ;;  %584 = vmatprep.subr.mxu0 %v1116_v4 }
  0x45   : > { %393 = vmatprep.mubr.bf16.mxu0 %v1115_v2  ;;  %585 = vmatpush2.msra.mxu0 %v539_v48 }
  0x46   : > { %586 = vmatprep.subr.mxu0 %v1116_v4  ;;  %994 = vmatprep.subr.mxu1 %v1116_v4 }
  0x47   : > { %587 = vmatpush2.msra.mxu0 %v538_v49  ;;  %1026 = vmatpush2.msra.mxu1 %v536_v54 }
  0x48   : > { %588 = vmatprep.subr.mxu0 %v1116_v4  ;;  %995 = vmatprep.subr.mxu1 %v1116_v4 }
  0x49   : > { %589 = vmatpush2.msra.mxu0 %v537_v52  ;;  %1027 = vmatpush2.msra.mxu1 %v535_v55 }
  0x4a   : > { %590 = vmatprep.subr.mxu0 %v1116_v4  ;;  %996 = vmatprep.subr.mxu1 %v1116_v4 }
  0x4b   : > { %591 = vmatpush2.msra.mxu0 %v536_v54  ;;  %1028 = vmatpush2.msra.mxu1 %v534_v56 }
  0x4c   : > { %937 = vmatmul.mubr.msk.bf16.gmra.mxu0 %vm261_vm0, %v206_v53  ;;  %592 = vmatprep.subr.mxu0 %v1116_v4 }
  0x4d   : > { %403 = vmatprep.mubr.bf16.mxu0 %v1115_v2  ;;  %593 = vmatpush2.msra.mxu0 %v535_v55 }
  0x4e   : > { %594 = vmatprep.subr.mxu0 %v1116_v4  ;;  %997 = vmatprep.subr.mxu1 %v1116_v4 }
  0x4f   : > { %595 = vmatpush2.msra.mxu0 %v534_v56  ;;  %1029 = vmatpush2.msra.mxu1 %v533_v59 }
  0x50   : > { %596 = vmatprep.subr.mxu0 %v1116_v4  ;;  %998 = vmatprep.subr.mxu1 %v1116_v4 }
  0x51   : > { %597 = vmatpush2.msra.mxu0 %v533_v59  ;;  %1030 = vmatpush2.msra.mxu1 %v532_v61 }
  0x52   : > { %598 = vmatprep.subr.mxu0 %v1116_v4  ;;  %999 = vmatprep.subr.mxu1 %v1116_v4 }
  0x53   : > { %599 = vmatpush2.msra.mxu0 %v532_v61  ;;  %1031 = vmatpush2.msra.mxu1 %v531_v62 }
  0x54   : > { %938 = vmatmul.mubr.msk.bf16.gmra.mxu0 %vm261_vm0, %v207_v60  ;;  %600 = vmatprep.subr.mxu0 %v1116_v4 }
  0x55   : > { %413 = vmatprep.mubr.bf16.mxu0 %v1115_v2  ;;  %601 = vmatpush2.msra.mxu0 %v531_v62 }
  0x56   : > { %602 = vmatprep.subr.mxu0 %v1116_v4  ;;  %1000 = vmatprep.subr.mxu1 %v1116_v4 }
  0x57   : > { %603 = vmatpush2.msra.mxu0 %v530_v3  ;;  %1032 = vmatpush2.msra.mxu1 %v530_v3 }
  0x58   : > { %604 = vmatprep.subr.mxu0 %v1116_v4  ;;  %1001 = vmatprep.subr.mxu1 %v1116_v4 }
  0x59   : > { %605 = vmatpush2.msra.mxu0 %v529_v7  ;;  %1033 = vmatpush2.msra.mxu1 %v529_v7 }
  0x5a   : > { %606 = vmatprep.subr.mxu0 %v1116_v4  ;;  %1002 = vmatprep.subr.mxu1 %v1116_v4  ;;  %v199_v4 = vld [vmem:[%s1183_s9 + $0xc0] sm:$0xff] }
  0x5b   : > { %607 = vmatpush2.msra.mxu0 %v528_v9  ;;  %1034 = vmatpush2.msra.mxu1 %v528_v9  ;;  %v212_v16 = vpack.c.bf16 %v199_v4, %v199_v4 }
  0x5c   : > { %939 = vmatmul.mubr.msk.bf16.gmra.mxu0 %vm261_vm0, %v208_v1 }
  0x5d   : > { %423 = vmatprep.mubr.bf16.mxu0 %v1115_v2 }
  0x64   : > { %940 = vmatmul.mubr.msk.bf16.gmra.mxu0 %vm261_vm0, %v209_v8 }
  0x65   : > { %433 = vmatprep.mubr.bf16.mxu0 %v1115_v2 }
  0x6c   : > { %941 = vmatmul.mubr.msk.bf16.gmra.mxu0 %vm261_vm0, %v210_v12 }
  0x6d   : > { %443 = vmatprep.mubr.bf16.mxu0 %v1115_v2 }
  0x74   : > { %942 = vmatmul.mubr.msk.bf16.gmra.mxu0 %vm261_vm0, %v211_v15 }
  0x75   : > { %453 = vmatprep.mubr.bf16.mxu0 %v1115_v2 }
  0x7c   : > { %943 = vmatmul.mubr.msk.bf16.gmra.mxu0 %vm261_vm0, %v212_v16 }
  0xdc   : > { %v335_v17 = vpop.f32.mrf.mxu0 }
  0xdd   : > { %v462_v20 = vmul.f32 %v335_v17, %v335_v17 }
  0xde   : > { %v337_v18 = vpop.f32.mrf.mxu0 }
  0xdf   : > { %v463_v19 = vmul.f32 %v337_v18, %v337_v18 }
  0xe0   : > { %v339_v21 = vpop.f32.mrf.mxu0 }
  0xe1   : > { %608 = vmatprep.mubr.f32.mxu0 %v463_v19  ;;  %v464_v24 = vmul.f32 %v339_v21, %v339_v21 }
  0xe2   : > { %v341_v22 = vpop.f32.mrf.mxu0  ;;  %609 = vmatmul.mubr.f32.vlgmr.msra.gmra.mxu0 %v462_v20 }
  0xe3   : > { %v465_v23 = vmul.f32 %v341_v22, %v341_v22 }
  0xe4   : > { %v345_v25 = vpop.f32.mrf.mxu0 }
  0xe5   : > { %613 = vmatprep.mubr.f32.mxu0 %v465_v23  ;;  %v466_v2 = vmul.f32 %v345_v25, %v345_v25 }
  0xe6   : > { %v347_v26 = vpop.f32.mrf.mxu0  ;;  %614 = vmatmul.mubr.f32.gmra.mxu0 %v464_v24 }
  0xe7   : > { %v467_v27 = vmul.f32 %v347_v26, %v347_v26 }
  0xe8   : > { %v349_v28 = vpop.f32.mrf.mxu0 }
  0xe9   : > { %618 = vmatprep.mubr.f32.mxu0 %v467_v27  ;;  %v468_v31 = vmul.f32 %v349_v28, %v349_v28 }
  0xea   : > { %v351_v29 = vpop.f32.mrf.mxu0  ;;  %619 = vmatmul.mubr.f32.gmra.mxu0 %v466_v2 }
  0xeb   : > { %v469_v30 = vmul.f32 %v351_v29, %v351_v29 }
  0xec   : > { %v355_v32 = vpop.f32.mrf.mxu0 }
  0xed   : > { %623 = vmatprep.mubr.f32.mxu0 %v469_v30  ;;  %v470_v35 = vmul.f32 %v355_v32, %v355_v32 }
  0xee   : > { %v357_v33 = vpop.f32.mrf.mxu0  ;;  %624 = vmatmul.mubr.f32.gmra.mxu0 %v468_v31 }
  0xef   : > { %v471_v34 = vmul.f32 %v357_v33, %v357_v33 }
  0xf0   : > { %v359_v36 = vpop.f32.mrf.mxu0 }
  0xf1   : > { %628 = vmatprep.mubr.f32.mxu0 %v471_v34  ;;  %v472_v39 = vmul.f32 %v359_v36, %v359_v36 }
  0xf2   : > { %v361_v37 = vpop.f32.mrf.mxu0  ;;  %629 = vmatmul.mubr.f32.gmra.mxu0 %v470_v35 }
  0xf3   : > { %v473_v38 = vmul.f32 %v361_v37, %v361_v37 }
  0xf4   : > { %v365_v40 = vpop.f32.mrf.mxu0 }
  0xf5   : > { %633 = vmatprep.mubr.f32.mxu1 %v473_v38  ;;  %v474_v43 = vmul.f32 %v365_v40, %v365_v40 }
  0xf6   : > { %v367_v41 = vpop.f32.mrf.mxu0  ;;  %634 = vmatmul.mubr.f32.vlgmr.msra.gmra.mxu1 %v472_v39 }
  0xf7   : > { %v475_v42 = vmul.f32 %v367_v41, %v367_v41 }
  0xf8   : > { %v369_v44 = vpop.f32.mrf.mxu0 }
  0xf9   : > { %638 = vmatprep.mubr.f32.mxu1 %v475_v42  ;;  %v476_v47 = vmul.f32 %v369_v44, %v369_v44 }
  0xfa   : > { %v371_v45 = vpop.f32.mrf.mxu0  ;;  %639 = vmatmul.mubr.f32.gmra.mxu1 %v474_v43 }
  0xfb   : > { %v477_v46 = vmul.f32 %v371_v45, %v371_v45 }
  0xfc   : > { %v375_v48 = vpop.f32.mrf.mxu0 }
  0xfd   : > { %643 = vmatprep.mubr.f32.mxu1 %v477_v46  ;;  %v478_v51 = vmul.f32 %v375_v48, %v375_v48 }
  0xfe   : > { %v377_v49 = vpop.f32.mrf.mxu0  ;;  %644 = vmatmul.mubr.f32.gmra.mxu1 %v476_v47 }
  0xff   : > { %v479_v50 = vmul.f32 %v377_v49, %v377_v49 }
 0x100   : > { %v379_v52 = vpop.f32.mrf.mxu0 }
 0x101   : > { %648 = vmatprep.mubr.f32.mxu1 %v479_v50  ;;  %v480_v55 = vmul.f32 %v379_v52, %v379_v52 }
 0x102   : > { %v381_v53 = vpop.f32.mrf.mxu0  ;;  %649 = vmatmul.mubr.f32.gmra.mxu1 %v478_v51 }
 0x103   : > { %v481_v54 = vmul.f32 %v381_v53, %v381_v53 }
 0x104   : > { %v385_v56 = vpop.f32.mrf.mxu0 }
 0x105   : > { %653 = vmatprep.mubr.f32.mxu1 %v481_v54  ;;  %v482_v59 = vmul.f32 %v385_v56, %v385_v56 }
 0x106   : > { %v387_v57 = vpop.f32.mrf.mxu0  ;;  %654 = vmatmul.mubr.f32.gmra.mxu1 %v480_v55 }
 0x107   : > { %v483_v58 = vmul.f32 %v387_v57, %v387_v57 }
 0x108   : > { %v389_v60 = vpop.f32.mrf.mxu0 }
 0x109   : > { %658 = vmatprep.mubr.f32.mxu1 %v483_v58  ;;  %v484_v63 = vmul.f32 %v389_v60, %v389_v60 }
 0x10a   : > { %v391_v61 = vpop.f32.mrf.mxu0  ;;  %659 = vmatmul.mubr.f32.gmra.mxu1 %v482_v59 }
 0x10b   : > { %v485_v62 = vmul.f32 %v391_v61, %v391_v61 }
 0x10c   : > { %v395_v0 = vpop.f32.mrf.mxu0 }
 0x10d   : > { %663 = vmatprep.mubr.f32.mxu1 %v485_v62  ;;  %v486_v5 = vmul.f32 %v395_v0, %v395_v0 }
 0x10e   : > { %v397_v1 = vpop.f32.mrf.mxu0  ;;  %664 = vmatmul.mubr.f32.gmra.mxu1 %v484_v63 }
 0x10f   : > { %v487_v3 = vmul.f32 %v397_v1, %v397_v1 }
 0x110   : > { %v399_v6 = vpop.f32.mrf.mxu0 }
 0x111   : > { %668 = vmatprep.mubr.f32.mxu1 %v487_v3  ;;  %v488_v9 = vmul.f32 %v399_v6, %v399_v6 }
 0x112   : > { %v401_v7 = vpop.f32.mrf.mxu0  ;;  %669 = vmatmul.mubr.f32.gmra.mxu1 %v486_v5 }
 0x113   : > { %v489_v8 = vmul.f32 %v401_v7, %v401_v7 }
 0x114   : > { %v405_v10 = vpop.f32.mrf.mxu0 }
 0x115   : > { %673 = vmatprep.mubr.f32.mxu1 %v489_v8  ;;  %v490_v13 = vmul.f32 %v405_v10, %v405_v10 }
 0x116   : > { %v407_v11 = vpop.f32.mrf.mxu0  ;;  %674 = vmatmul.mubr.f32.gmra.mxu1 %v488_v9 }
 0x117   : > { %v491_v12 = vmul.f32 %v407_v11, %v407_v11 }
 0x118   : > { %v409_v14 = vpop.f32.mrf.mxu0 }
 0x119   : > { %678 = vmatprep.mubr.f32.mxu1 %v491_v12  ;;  %v492_v16 = vmul.f32 %v409_v14, %v409_v14 }
 0x11a   : > { %v411_v15 = vpop.f32.mrf.mxu0  ;;  %679 = vmatmul.mubr.f32.gmra.mxu1 %v490_v13 }
 0x11b   : > { %v493_v4 = vmul.f32 %v411_v15, %v411_v15 }
 0x11c   : > { %v415_v17 = vpop.f32.mrf.mxu0 }
 0x11d   : > { %683 = vmatprep.mubr.f32.mxu1 %v493_v4  ;;  %v494_v20 = vmul.f32 %v415_v17, %v415_v17 }
 0x11e   : > { %v417_v18 = vpop.f32.mrf.mxu0  ;;  %684 = vmatmul.mubr.f32.gmra.mxu1 %v492_v16 }
 0x11f   : > { %v495_v19 = vmul.f32 %v417_v18, %v417_v18 }
 0x120   : > { %v419_v21 = vpop.f32.mrf.mxu0 }
 0x121   : > { %688 = vmatprep.mubr.f32.mxu1 %v495_v19  ;;  %v496_v24 = vmul.f32 %v419_v21, %v419_v21 }
 0x122   : > { %v421_v22 = vpop.f32.mrf.mxu0  ;;  %689 = vmatmul.mubr.f32.gmra.mxu1 %v494_v20 }
 0x123   : > { %v497_v23 = vmul.f32 %v421_v22, %v421_v22 }
 0x124   : > { %v425_v25 = vpop.f32.mrf.mxu0 }
 0x125   : > { %693 = vmatprep.mubr.f32.mxu1 %v497_v23  ;;  %v498_v2 = vmul.f32 %v425_v25, %v425_v25 }
 0x126   : > { %v427_v26 = vpop.f32.mrf.mxu0  ;;  %694 = vmatmul.mubr.f32.gmra.mxu1 %v496_v24 }
 0x127   : > { %v499_v27 = vmul.f32 %v427_v26, %v427_v26 }
 0x128   : > { %v429_v28 = vpop.f32.mrf.mxu0 }
 0x129   : > { %698 = vmatprep.mubr.f32.mxu1 %v499_v27  ;;  %v500_v31 = vmul.f32 %v429_v28, %v429_v28 }
 0x12a   : > { %v431_v29 = vpop.f32.mrf.mxu0  ;;  %699 = vmatmul.mubr.f32.gmra.mxu1 %v498_v2 }
 0x12b   : > { %v501_v30 = vmul.f32 %v431_v29, %v431_v29 }
 0x12c   : > { %v435_v32 = vpop.f32.mrf.mxu0 }
 0x12d   : > { %703 = vmatprep.mubr.f32.mxu1 %v501_v30  ;;  %v502_v35 = vmul.f32 %v435_v32, %v435_v32 }
 0x12e   : > { %v437_v33 = vpop.f32.mrf.mxu0  ;;  %704 = vmatmul.mubr.f32.gmra.mxu1 %v500_v31 }
 0x12f   : > { %v503_v34 = vmul.f32 %v437_v33, %v437_v33 }
 0x130   : > { %v439_v36 = vpop.f32.mrf.mxu0 }
 0x131   : > { %708 = vmatprep.mubr.f32.mxu1 %v503_v34  ;;  %v504_v39 = vmul.f32 %v439_v36, %v439_v36 }
 0x132   : > { %v441_v37 = vpop.f32.mrf.mxu0  ;;  %709 = vmatmul.mubr.f32.gmra.mxu1 %v502_v35 }
 0x133   : > { %v505_v38 = vmul.f32 %v441_v37, %v441_v37 }
 0x134   : > { %v445_v40 = vpop.f32.mrf.mxu0 }
 0x135   : > { %713 = vmatprep.mubr.f32.mxu1 %v505_v38  ;;  %v506_v43 = vmul.f32 %v445_v40, %v445_v40 }
 0x136   : > { %v447_v41 = vpop.f32.mrf.mxu0  ;;  %714 = vmatmul.mubr.f32.gmra.mxu1 %v504_v39 }
 0x137   : > { %v507_v42 = vmul.f32 %v447_v41, %v447_v41 }
 0x138   : > { %v449_v44 = vpop.f32.mrf.mxu0 }
 0x139   : > { %718 = vmatprep.mubr.f32.mxu1 %v507_v42  ;;  %v508_v47 = vmul.f32 %v449_v44, %v449_v44 }
 0x13a   : > { %v451_v45 = vpop.f32.mrf.mxu0  ;;  %719 = vmatmul.mubr.f32.gmra.mxu1 %v506_v43 }
 0x13b   : > { %v509_v46 = vmul.f32 %v451_v45, %v451_v45 }
 0x13c   : > { %v455_v48 = vpop.f32.mrf.mxu0 }
 0x13d   : > { %723 = vmatprep.mubr.f32.mxu1 %v509_v46  ;;  %v510_v51 = vmul.f32 %v455_v48, %v455_v48 }
 0x13e   : > { %v457_v49 = vpop.f32.mrf.mxu0  ;;  %724 = vmatmul.mubr.f32.gmra.mxu1 %v508_v47 }
 0x13f   : > { %v511_v50 = vmul.f32 %v457_v49, %v457_v49 }
 0x140   : > { %v459_v52 = vpop.f32.mrf.mxu0 }
 0x141   : > { %728 = vmatprep.mubr.f32.mxu1 %v511_v50 }
 0x142   : > { %v460_v53 = vpop.f32.mrf.mxu0  ;;  %729 = vmatmul.mubr.f32.gmra.mxu1 %v510_v51 }
 0x1a2   : > { %v610_v54 = vpop.f32.mrf.mxu0 }
 0x1a3   : > { %v611_v55 = vadd.f32 1e-05, %v610_v54 }
 0x1a4   : > { %v612_v56 = vpop.f32.mrf.mxu0 }
 0x1a5   : > { %1057 = vlog2.f32 %v611_v55 }
 0x1a6   : > { %v615_v57 = vpop.f32.mrf.mxu0 }
 0x1a7   : > { %v616_v58 = vadd.f32 1e-05, %v615_v57 }
 0x1a8   : > { %v617_v59 = vpop.f32.mrf.mxu0 }
 0x1a9   : > { %1059 = vlog2.f32 %v616_v58 }
 0x1aa   : > { %v620_v60 = vpop.f32.mrf.mxu0 }
 0x1ab   : > { %v621_v61 = vadd.f32 1e-05, %v620_v60 }
 0x1ac   : > { %v622_v62 = vpop.f32.mrf.mxu0 }
 0x1ad   : > { %1061 = vlog2.f32 %v621_v61 }
 0x1ae   : > { %v625_v63 = vpop.f32.mrf.mxu0 }
 0x1af   : > { %v626_v0 = vadd.f32 1e-05, %v625_v63 }
 0x1b0   : > { %v627_v1 = vpop.f32.mrf.mxu0 }
 0x1b1   : > { %1063 = vlog2.f32 %v626_v0 }
 0x1b2   : > { %v1058_v3 = vpop.eup %1057  ;;  %v630_v5 = vpop.f32.mrf.mxu0 }
 0x1b3   : > { %v735_v6 = vmul.f32 0.6931472, %v1058_v3  ;;  %v631_v7 = vadd.f32 1e-05, %v630_v5 }
 0x1b4   : > { %v632_v8 = vpop.f32.mrf.mxu0 }
 0x1b5   : > { %v944_v9 = vadd.f32 11.512925, %v735_v6  ;;  %1065 = vlog2.f32 %v631_v7 }
 0x1b6   : > { %v1060_v10 = vpop.eup %1059  ;;  %v635_v11 = vpop.f32.mrf.mxu1 }
 0x1b7   : > { %v809_v12 = vmul.f32 0.0868589, %v944_v9  ;;  %v737_v13 = vmul.f32 0.6931472, %v1060_v10  ;;  %v636_v14 = vadd.f32 1e-05, %v635_v11 }
 0x1b8   : > { %v637_v15 = vpop.f32.mrf.mxu1 }
 0x1b9   : > { %835 = vst.msk [vmem:[%s1395_s30] sm:$0xff] %vm834_vm1, %v809_v12  ;;  %v945_v4 = vadd.f32 11.512925, %v737_v13  ;;  %1067 = vlog2.f32 %v636_v14 }
 0x1ba   : > { %v1062_v16 = vpop.eup %1061  ;;  %v640_v17 = vpop.f32.mrf.mxu1 }
 0x1bb   : > { %v810_v18 = vmul.f32 0.0868589, %v945_v4  ;;  %v739_v19 = vmul.f32 0.6931472, %v1062_v16  ;;  %v641_v20 = vadd.f32 1e-05, %v640_v17 }
 0x1bc   : > { %v642_v21 = vpop.f32.mrf.mxu1 }
 0x1bd   : > { %836 = vst.msk [vmem:[%s1395_s30 + $0x8] sm:$0xff] %vm834_vm1, %v810_v18  ;;  %v946_v22 = vadd.f32 11.512925, %v739_v19  ;;  %1069 = vlog2.f32 %v641_v20 }
 0x1be   : > { %v1064_v23 = vpop.eup %1063  ;;  %v645_v24 = vpop.f32.mrf.mxu1 }
 0x1bf   : > { %v811_v25 = vmul.f32 0.0868589, %v946_v22  ;;  %v741_v26 = vmul.f32 0.6931472, %v1064_v23  ;;  %v646_v27 = vadd.f32 1e-05, %v645_v24 }
 0x1c0   : > { %v647_v2 = vpop.f32.mrf.mxu1 }
 0x1c1   : > { %837 = vst.msk [vmem:[%s1395_s30 + $0x10] sm:$0xff] %vm834_vm1, %v811_v25  ;;  %v947_v28 = vadd.f32 11.512925, %v741_v26  ;;  %1071 = vlog2.f32 %v646_v27 }
 0x1c2   : > { %v1066_v29 = vpop.eup %1065  ;;  %v650_v30 = vpop.f32.mrf.mxu1 }
 0x1c3   : > { %v812_v31 = vmul.f32 0.0868589, %v947_v28  ;;  %v743_v32 = vmul.f32 0.6931472, %v1066_v29  ;;  %v651_v33 = vadd.f32 1e-05, %v650_v30 }
 0x1c4   : > { %v652_v34 = vpop.f32.mrf.mxu1 }
 0x1c5   : > { %838 = vst.msk [vmem:[%s1395_s30 + $0x18] sm:$0xff] %vm834_vm1, %v812_v31  ;;  %v948_v35 = vadd.f32 11.512925, %v743_v32  ;;  %1073 = vlog2.f32 %v651_v33 }
 0x1c6   : > { %v1068_v36 = vpop.eup %1067  ;;  %v655_v37 = vpop.f32.mrf.mxu1 }
 0x1c7   : > { %v813_v38 = vmul.f32 0.0868589, %v948_v35  ;;  %v745_v39 = vmul.f32 0.6931472, %v1068_v36  ;;  %v656_v40 = vadd.f32 1e-05, %v655_v37 }
 0x1c8   : > { %v657_v41 = vpop.f32.mrf.mxu1 }
 0x1c9   : > { %839 = vst.msk [vmem:[%s1395_s30 + $0x20] sm:$0xff] %vm834_vm1, %v813_v38  ;;  %v949_v42 = vadd.f32 11.512925, %v745_v39  ;;  %1075 = vlog2.f32 %v656_v40 }
 0x1ca   : > { %v1070_v43 = vpop.eup %1069  ;;  %v660_v44 = vpop.f32.mrf.mxu1 }
 0x1cb   : > { %v814_v45 = vmul.f32 0.0868589, %v949_v42  ;;  %v747_v46 = vmul.f32 0.6931472, %v1070_v43  ;;  %v661_v47 = vadd.f32 1e-05, %v660_v44 }
 0x1cc   : > { %v662_v48 = vpop.f32.mrf.mxu1 }
 0x1cd   : > { %840 = vst.msk [vmem:[%s1395_s30 + $0x28] sm:$0xff] %vm834_vm1, %v814_v45  ;;  %v950_v49 = vadd.f32 11.512925, %v747_v46  ;;  %1077 = vlog2.f32 %v661_v47 }
 0x1ce   : > { %v1072_v50 = vpop.eup %1071  ;;  %v665_v51 = vpop.f32.mrf.mxu1 }
 0x1cf   : > { %v815_v52 = vmul.f32 0.0868589, %v950_v49  ;;  %v749_v53 = vmul.f32 0.6931472, %v1072_v50  ;;  %v666_v54 = vadd.f32 1e-05, %v665_v51 }
 0x1d0   : > { %v667_v55 = vpop.f32.mrf.mxu1 }
 0x1d1   : > { %841 = vst.msk [vmem:[%s1395_s30 + $0x30] sm:$0xff] %vm834_vm1, %v815_v52  ;;  %v951_v56 = vadd.f32 11.512925, %v749_v53  ;;  %1079 = vlog2.f32 %v666_v54 }
 0x1d2   : > { %v1074_v57 = vpop.eup %1073  ;;  %v670_v58 = vpop.f32.mrf.mxu1 }
 0x1d3   : > { %v816_v59 = vmul.f32 0.0868589, %v951_v56  ;;  %v751_v60 = vmul.f32 0.6931472, %v1074_v57  ;;  %v671_v61 = vadd.f32 1e-05, %v670_v58 }
 0x1d4   : > { %v672_v62 = vpop.f32.mrf.mxu1 }
 0x1d5   : > { %842 = vst.msk [vmem:[%s1395_s30 + $0x38] sm:$0xff] %vm834_vm1, %v816_v59  ;;  %v952_v63 = vadd.f32 11.512925, %v751_v60  ;;  %1081 = vlog2.f32 %v671_v61 }
 0x1d6   : > { %v1076_v0 = vpop.eup %1075  ;;  %v675_v1 = vpop.f32.mrf.mxu1 }
 0x1d7   : > { %v817_v3 = vmul.f32 0.0868589, %v952_v63  ;;  %v753_v5 = vmul.f32 0.6931472, %v1076_v0  ;;  %v676_v6 = vadd.f32 1e-05, %v675_v1 }
 0x1d8   : > { %v677_v7 = vpop.f32.mrf.mxu1 }
 0x1d9   : > { %843 = vst.msk [vmem:[%s1395_s30 + $0x40] sm:$0xff] %vm834_vm1, %v817_v3  ;;  %v953_v8 = vadd.f32 11.512925, %v753_v5  ;;  %1083 = vlog2.f32 %v676_v6 }
 0x1da   : > { %v1078_v9 = vpop.eup %1077  ;;  %v680_v10 = vpop.f32.mrf.mxu1 }
 0x1db   : > { %v818_v11 = vmul.f32 0.0868589, %v953_v8  ;;  %v755_v12 = vmul.f32 0.6931472, %v1078_v9  ;;  %v681_v13 = vadd.f32 1e-05, %v680_v10 }
 0x1dc   : > { %v682_v14 = vpop.f32.mrf.mxu1 }
 0x1dd   : > { %844 = vst.msk [vmem:[%s1395_s30 + $0x48] sm:$0xff] %vm834_vm1, %v818_v11  ;;  %v954_v15 = vadd.f32 11.512925, %v755_v12  ;;  %1085 = vlog2.f32 %v681_v13 }
 0x1de   : > { %v1080_v4 = vpop.eup %1079  ;;  %v685_v16 = vpop.f32.mrf.mxu1 }
 0x1df   : > { %v819_v17 = vmul.f32 0.0868589, %v954_v15  ;;  %v757_v18 = vmul.f32 0.6931472, %v1080_v4  ;;  %v686_v19 = vadd.f32 1e-05, %v685_v16 }
 0x1e0   : > { %v687_v20 = vpop.f32.mrf.mxu1 }
 0x1e1   : > { %845 = vst.msk [vmem:[%s1395_s30 + $0x50] sm:$0xff] %vm834_vm1, %v819_v17  ;;  %v955_v21 = vadd.f32 11.512925, %v757_v18  ;;  %1087 = vlog2.f32 %v686_v19 }
 0x1e2   : > { %v1082_v22 = vpop.eup %1081  ;;  %v690_v23 = vpop.f32.mrf.mxu1 }
 0x1e3   : > { %v820_v24 = vmul.f32 0.0868589, %v955_v21  ;;  %v759_v25 = vmul.f32 0.6931472, %v1082_v22  ;;  %v691_v26 = vadd.f32 1e-05, %v690_v23 }
 0x1e4   : > { %v692_v27 = vpop.f32.mrf.mxu1 }
 0x1e5   : > { %846 = vst.msk [vmem:[%s1395_s30 + $0x58] sm:$0xff] %vm834_vm1, %v820_v24  ;;  %v956_v2 = vadd.f32 11.512925, %v759_v25  ;;  %1089 = vlog2.f32 %v691_v26 }
 0x1e6   : > { %v1084_v28 = vpop.eup %1083  ;;  %v695_v29 = vpop.f32.mrf.mxu1 }
 0x1e7   : > { %v821_v30 = vmul.f32 0.0868589, %v956_v2  ;;  %v761_v31 = vmul.f32 0.6931472, %v1084_v28  ;;  %v696_v32 = vadd.f32 1e-05, %v695_v29 }
 0x1e8   : > { %v697_v33 = vpop.f32.mrf.mxu1 }
 0x1e9   : > { %847 = vst.msk [vmem:[%s1395_s30 + $0x60] sm:$0xff] %vm834_vm1, %v821_v30  ;;  %v957_v34 = vadd.f32 11.512925, %v761_v31  ;;  %1091 = vlog2.f32 %v696_v32 }
 0x1ea   : > { %v1086_v35 = vpop.eup %1085  ;;  %v700_v36 = vpop.f32.mrf.mxu1 }
 0x1eb   : > { %v822_v37 = vmul.f32 0.0868589, %v957_v34  ;;  %v763_v38 = vmul.f32 0.6931472, %v1086_v35  ;;  %v701_v39 = vadd.f32 1e-05, %v700_v36 }
 0x1ec   : > { %v702_v40 = vpop.f32.mrf.mxu1 }
 0x1ed   : > { %848 = vst.msk [vmem:[%s1395_s30 + $0x68] sm:$0xff] %vm834_vm1, %v822_v37  ;;  %v958_v41 = vadd.f32 11.512925, %v763_v38  ;;  %1093 = vlog2.f32 %v701_v39 }
 0x1ee   : > { %v1088_v42 = vpop.eup %1087  ;;  %v705_v43 = vpop.f32.mrf.mxu1 }
 0x1ef   : > { %v823_v44 = vmul.f32 0.0868589, %v958_v41  ;;  %v765_v45 = vmul.f32 0.6931472, %v1088_v42  ;;  %v706_v46 = vadd.f32 1e-05, %v705_v43 }
 0x1f0   : > { %v707_v47 = vpop.f32.mrf.mxu1 }
 0x1f1   : > { %849 = vst.msk [vmem:[%s1395_s30 + $0x70] sm:$0xff] %vm834_vm1, %v823_v44  ;;  %v959_v48 = vadd.f32 11.512925, %v765_v45  ;;  %1095 = vlog2.f32 %v706_v46 }
 0x1f2   : > { %v1090_v49 = vpop.eup %1089  ;;  %v710_v50 = vpop.f32.mrf.mxu1 }
 0x1f3   : > { %v824_v51 = vmul.f32 0.0868589, %v959_v48  ;;  %v767_v52 = vmul.f32 0.6931472, %v1090_v49  ;;  %v711_v53 = vadd.f32 1e-05, %v710_v50 }
 0x1f4   : > { %v712_v54 = vpop.f32.mrf.mxu1 }
 0x1f5   : > { %850 = vst.msk [vmem:[%s1395_s30 + $0x78] sm:$0xff] %vm834_vm1, %v824_v51  ;;  %v960_v55 = vadd.f32 11.512925, %v767_v52  ;;  %1097 = vlog2.f32 %v711_v53 }
 0x1f6   : > { %v1092_v56 = vpop.eup %1091  ;;  %v715_v57 = vpop.f32.mrf.mxu1 }
 0x1f7   : > { %v825_v58 = vmul.f32 0.0868589, %v960_v55  ;;  %v769_v59 = vmul.f32 0.6931472, %v1092_v56  ;;  %v716_v60 = vadd.f32 1e-05, %v715_v57 }
 0x1f8   : > { %v717_v61 = vpop.f32.mrf.mxu1 }
 0x1f9   : > { %851 = vst.msk [vmem:[%s1395_s30 + $0x80] sm:$0xff] %vm834_vm1, %v825_v58  ;;  %v961_v62 = vadd.f32 11.512925, %v769_v59  ;;  %1099 = vlog2.f32 %v716_v60 }
 0x1fa   : > { %v1094_v63 = vpop.eup %1093  ;;  %v720_v0 = vpop.f32.mrf.mxu1 }
 0x1fb   : > { %v826_v1 = vmul.f32 0.0868589, %v961_v62  ;;  %v771_v3 = vmul.f32 0.6931472, %v1094_v63  ;;  %v721_v5 = vadd.f32 1e-05, %v720_v0 }
 0x1fc   : > { %v722_v6 = vpop.f32.mrf.mxu1 }
 0x1fd   : > { %852 = vst.msk [vmem:[%s1395_s30 + $0x88] sm:$0xff] %vm834_vm1, %v826_v1  ;;  %v962_v7 = vadd.f32 11.512925, %v771_v3  ;;  %1101 = vlog2.f32 %v721_v5 }
 0x1fe   : > { %v1096_v8 = vpop.eup %1095  ;;  %v725_v9 = vpop.f32.mrf.mxu1 }
 0x1ff   : > { %v827_v10 = vmul.f32 0.0868589, %v962_v7  ;;  %v773_v11 = vmul.f32 0.6931472, %v1096_v8  ;;  %v726_v12 = vadd.f32 1e-05, %v725_v9 }
 0x200   : > { %v727_v13 = vpop.f32.mrf.mxu1 }
 0x201   : > { %853 = vst.msk [vmem:[%s1395_s30 + $0x90] sm:$0xff] %vm834_vm1, %v827_v10  ;;  %v963_v14 = vadd.f32 11.512925, %v773_v11  ;;  %1103 = vlog2.f32 %v726_v12 }
 0x202   : > { %v1098_v15 = vpop.eup %1097  ;;  %v730_v4 = vpop.f32.mrf.mxu1 }
 0x203   : > { %v828_v16 = vmul.f32 0.0868589, %v963_v14  ;;  %v775_v17 = vmul.f32 0.6931472, %v1098_v15  ;;  %v731_v18 = vadd.f32 1e-05, %v730_v4 }
 0x204   : > { %v732_v19 = vpop.f32.mrf.mxu1 }
 0x205   : > { %854 = vst.msk [vmem:[%s1395_s30 + $0x98] sm:$0xff] %vm834_vm1, %v828_v16  ;;  %v964_v20 = vadd.f32 11.512925, %v775_v17  ;;  %1105 = vlog2.f32 %v731_v18 }
 0x206   : > { %v1100_v21 = vpop.eup %1099 }
 0x207   : > { %v829_v22 = vmul.f32 0.0868589, %v964_v20  ;;  %v777_v23 = vmul.f32 0.6931472, %v1100_v21 }
 0x209   : > { %855 = vst.msk [vmem:[%s1395_s30 + $0xa0] sm:$0xff] %vm834_vm1, %v829_v22  ;;  %v965_v24 = vadd.f32 11.512925, %v777_v23 }
 0x20a   : > { %v1102_v25 = vpop.eup %1101 }
 0x20b   : > { %v830_v26 = vmul.f32 0.0868589, %v965_v24  ;;  %v779_v27 = vmul.f32 0.6931472, %v1102_v25 }
 0x20d   : > { %856 = vst.msk [vmem:[%s1395_s30 + $0xa8] sm:$0xff] %vm834_vm1, %v830_v26  ;;  %v966_v2 = vadd.f32 11.512925, %v779_v27 }
 0x20e   : > { %v1104_v28 = vpop.eup %1103 }
 0x20f   : > { %v831_v29 = vmul.f32 0.0868589, %v966_v2  ;;  %v781_v30 = vmul.f32 0.6931472, %v1104_v28 }
 0x211   : > { %857 = vst.msk [vmem:[%s1395_s30 + $0xb0] sm:$0xff] %vm834_vm1, %v831_v29  ;;  %v967_v31 = vadd.f32 11.512925, %v781_v30 }
 0x212   : > { %v1106_v32 = vpop.eup %1105 }
 0x213   : > { %v832_v33 = vmul.f32 0.0868589, %v967_v31  ;;  %v783_v34 = vmul.f32 0.6931472, %v1106_v32 }
 0x215   : > { %858 = vst.msk [vmem:[%s1395_s30 + $0xb8] sm:$0xff] %vm834_vm1, %v832_v33  ;;  %v968_v35 = vadd.f32 11.512925, %v783_v34 }
 0x217   : > { %v833_v36 = vmul.f32 0.0868589, %v968_v35 }
 0x219   : > { %859 = vst.msk [vmem:[%s1395_s30 + $0xc0] sm:$0xff] %vm834_vm1, %v833_v36 }
 0x21a PF: > { %s13_s12 = sadd.s32 1, %s1113_s12  }
 0x21b   : > { %p10_p4 = scmp.ge.s32.totalorder %s13_s12, 4  }
 0x21d   :  { %12 = sbr.rel (!%p10_p4) target bundleno = 1 (0x1), region = 62 }

</bundles_post_ra>
